<compile_context>
chip_gen: v7x
topology: tpu7x:2x2x1
jax: 0.10.0
libtpu: 0.0.40
codegen_flags: <defaults>
</compile_context>

<pallas_src>
import jax
import jax.numpy as jnp
from jax.experimental import pallas as pl
from jax.experimental.pallas import tpu as pltpu


_LANES = 128                      # vreg lane width
_SUBLANES = 8                     # vreg sublane count
_ALIGN = _LANES * _SUBLANES       # 1024-element (8x128) alignment unit
_MAX_TILE_BYTES = 8 * 1024 * 1024  # per-buffer tile cap (review: 6-8 MiB)
_SPLIT_MIN_BYTES = 1 << 20        # only shard across TCs above ~1 MiB of data


def _tpu_vmem_bytes():
    """Physical VMEM of the local chip; conservative 64 MiB (v7x) fallback."""
    try:
        return int(pltpu.get_tpu_info().vmem_capacity_bytes)
    except Exception:
        return 64 * 1024 * 1024


def _num_tensorcores():
    """2 on v7x-class chips (megacore-sharded grid helps), else 1."""
    try:
        kind = jax.devices()[0].device_kind.lower()
        if "v7" in kind:
            return 2
    except Exception:
        pass
    return 1


def _h_sigmoid_kernel(x_ref, o_ref):
    # relu6(x + 3) / 6, computed in f32 on the VPU (DMA-bound; math is free filler).
    v = x_ref[...].astype(jnp.float32)
    y = jnp.clip(v + 3.0, 0.0, 6.0) * (1.0 / 6.0)
    o_ref[...] = y.astype(o_ref.dtype)


def _run_2d(x2d, block_rows, vmem_limit):
    rows, _ = x2d.shape
    grid = (pl.cdiv(rows, block_rows),)   # edge block (if any) is masked by Pallas
    return pl.pallas_call(
        _h_sigmoid_kernel,
        out_shape=jax.ShapeDtypeStruct(x2d.shape, x2d.dtype),
        grid=grid,
        in_specs=[pl.BlockSpec((block_rows, _LANES), lambda i: (i, 0))],
        out_specs=pl.BlockSpec((block_rows, _LANES), lambda i: (i, 0)),
        compiler_params=pltpu.CompilerParams(
            dimension_semantics=("parallel",),   # shards steps across TCs on v7x
            vmem_limit_bytes=int(vmem_limit),
        ),
    )(x2d)


def h_sigmoid(x):
    """Elementwise h_sigmoid via a single lane-dense Pallas kernel. Shape-agnostic."""
    orig_shape = x.shape
    orig_dtype = x.dtype
    n = x.size
    if n == 0:
        return x

    itemsize = jnp.dtype(orig_dtype).itemsize
    bytes_per_row = _LANES * itemsize

    # ---- choose block size (multiple of 8 rows) -------------------------------
    rows_aligned = (-(-n // _ALIGN)) * _SUBLANES          # rows after 1024-elem align
    vmem = _tpu_vmem_bytes()
    per_buf_cap = min(_MAX_TILE_BYTES, vmem // 8)          # keep >=2x headroom vs 4x tile
    cap_rows = max(_SUBLANES, (per_buf_cap // bytes_per_row) // _SUBLANES * _SUBLANES)
    block_rows = min(cap_rows, rows_aligned)

    # v7x: ensure >= num_cores grid steps for medium/large inputs (HBM-bound op,
    # each TC has its own HBM path). Single-TC chips keep one big step.
    ncores = _num_tensorcores()
    if ncores > 1 and rows_aligned * bytes_per_row >= _SPLIT_MIN_BYTES:
        per_core_rows = -(-rows_aligned // ncores)
        per_core_rows = max(_SUBLANES, (-(-per_core_rows // _SUBLANES)) * _SUBLANES)
        block_rows = min(block_rows, per_core_rows)

    # VMEM budget: in + out, double-buffered, plus headroom.
    vmem_limit = min(vmem, max(4 * block_rows * bytes_per_row + (4 << 20), 16 << 20))

    # ---- fast path: already 8x128-aligned -> zero-copy reshape ----------------
    if n % _ALIGN == 0:
        x2d = x.reshape(n // _LANES, _LANES)               # free bitcast-reshape
        out2d = _run_2d(x2d, block_rows, vmem_limit)
        return out2d.reshape(orig_shape)

    # ---- padded path: pad only to 8x128 alignment, slice back afterwards ------
    n_padded = rows_aligned * _LANES
    flat = jnp.pad(x.reshape(-1), (0, n_padded - n))
    x2d = flat.reshape(rows_aligned, _LANES)
    out2d = _run_2d(x2d, block_rows, vmem_limit)
    return out2d.reshape(-1)[:n].reshape(orig_shape)


# --------------------------- pure-JAX reference -------------------------------
def h_sigmoid_ref(x):
    return jnp.clip(x.astype(jnp.float32) + 3.0, 0.0, 6.0) / 6.0


# ----------------------------------- main --------------------------------------
if __name__ == "__main__":
    key = jax.random.PRNGKey(0)
    k1, k2, k3 = jax.random.split(key, 3)

    # Primary test: NCHW tensor like the PyTorch module would see (aligned fast path).
    x = jax.random.normal(k1, (2, 4, 16, 16), jnp.float32) * 4.0
    out = jax.block_until_ready(jax.jit(h_sigmoid)(x))
    ref = h_sigmoid_ref(x)
    assert out.shape == x.shape, out.shape
    err = float(jnp.max(jnp.abs(out - ref)))
    assert err < 1e-6, f"max abs error vs reference: {err}"

    # Secondary test: odd, non-1024-aligned shape exercises the padded/masked path.
    x2 = jax.random.normal(k2, (3, 5, 7), jnp.float32) * 4.0
    out2 = jax.block_until_ready(jax.jit(h_sigmoid)(x2))
    err2 = float(jnp.max(jnp.abs(out2 - h_sigmoid_ref(x2))))
    assert out2.shape == x2.shape, out2.shape
    assert err2 < 1e-6, f"max abs error vs reference (odd shape): {err2}"

    # Tertiary test: bf16 input, larger aligned shape.
    x3 = (jax.random.normal(k3, (4, 8, 32, 32), jnp.float32) * 4.0).astype(jnp.bfloat16)
    out3 = jax.block_until_ready(jax.jit(h_sigmoid)(x3))
    err3 = float(jnp.max(jnp.abs(out3.astype(jnp.float32) -
                                 h_sigmoid_ref(x3).astype(jnp.bfloat16).astype(jnp.float32))))
    assert out3.shape == x3.shape and out3.dtype == jnp.bfloat16
    assert err3 < 1e-2, f"max abs error vs reference (bf16): {err3}"

    print("KERNEL_OK")
</pallas_src>

<mosaic_0001>
module attributes {stable_mosaic.version = 11 : i64} {
  func.func @_h_sigmoid_kernel(%arg0: i32, %arg1: memref<16x128xf32, #tpu.memory_space<vmem>>, %arg2: memref<16x128xf32, #tpu.memory_space<vmem>>) attributes {dimension_semantics = [#tpu.dimension_semantics<parallel>], iteration_bounds = array<i64: 1>, scalar_prefetch = 0 : i64, scratch_operands = 0 : i64, tpu.core_type = #tpu.core_type<tc>, window_params = [{transform_indices = @transform_0, window_bounds = array<i64: 16, 128>}, {transform_indices = @transform_1, window_bounds = array<i64: 16, 128>}]} {
    %c0 = arith.constant 0 : index
    %c0_0 = arith.constant 0 : index
    %0 = vector.load %arg1[%c0, %c0_0] : memref<16x128xf32, #tpu.memory_space<vmem>>, vector<16x128xf32>
    %cst = arith.constant 3.000000e+00 : f32
    %1 = vector.broadcast %cst : f32 to vector<16x128xf32>
    %2 = arith.addf %0, %1 : vector<16x128xf32>
    %cst_1 = arith.constant 0.000000e+00 : f32
    %cst_2 = arith.constant 6.000000e+00 : f32
    %3 = vector.broadcast %cst_1 : f32 to vector<16x128xf32>
    %4 = arith.maximumf %3, %2 : vector<16x128xf32>
    %5 = vector.broadcast %cst_2 : f32 to vector<16x128xf32>
    %6 = arith.minimumf %5, %4 : vector<16x128xf32>
    %cst_3 = arith.constant 0.166666672 : f32
    %7 = vector.broadcast %cst_3 : f32 to vector<16x128xf32>
    %8 = arith.mulf %6, %7 : vector<16x128xf32>
    %c0_4 = arith.constant 0 : index
    %c0_5 = arith.constant 0 : index
    %9 = vector.load %arg2[%c0_4, %c0_5] : memref<16x128xf32, #tpu.memory_space<vmem>>, vector<16x128xf32>
    tpu.vector_store %arg2[%c0_4, %c0_5], %8 {strides = array<i32>} : memref<16x128xf32, #tpu.memory_space<vmem>>, vector<16x128xf32>,
    return
  }
  func.func @transform_0(%arg0: i32) -> (i32, i32) {
    %c0_i32 = arith.constant 0 : i32
    %c0_i32_0 = arith.constant 0 : i32
    return %arg0, %c0_i32 : i32, i32
  }
  func.func @transform_1(%arg0: i32) -> (i32, i32) {
    %c0_i32 = arith.constant 0 : i32
    %c0_i32_0 = arith.constant 0 : i32
    return %arg0, %c0_i32 : i32, i32
  }
}

</mosaic_0001>

<bundles_post_ra>
// kernel: h_sigmoid.1
= control target key start
LH: loop header
LB: loop body
LE: loop exit
PB: predicated region body
PF: predicated region fallthrough
CT: control target
= control target key end

     0   :  { %s46_s0 = inlined_call_operand.vmem [shape: f32[16,128], index: 0, kind: input, shape index: {}]   ;;  %s47_s1 = inlined_call_operand.vmem [shape: f32[16,128], index: 1, kind: output, shape index: {}]  }
   0x1   :  { %v8_v0 = vld [vmem:[%s46_s0] sm:$0xff]  ;;  %v9_v1 = vld [vmem:[%s46_s0 + $0x8] sm:$0xff] }
   0x2   :  { %v10_v2 = vadd.f32 3.0, %v8_v0  ;;  %v11_v3 = vadd.f32 3.0, %v9_v1 }
   0x4   :  { %v12_v4 = vmax.f32 %v10_v2, 0.0  ;;  %v13_v5 = vmax.f32 %v11_v3, 0.0 }
   0x6   :  { %v14_v6 = vmin.f32 %v12_v4, 6.0  ;;  %v15_v7 = vmin.f32 %v13_v5, 6.0 }
   0x8   :  { %v16_v8 = vmul.f32 0.16666667, %v14_v6  ;;  %v17_v9 = vmul.f32 0.16666667, %v15_v7 }
   0xa   :  { %18 = vst [vmem:[%s47_s1] sm:$0xff] %v16_v8  ;;  %19 = vst [vmem:[%s47_s1 + $0x8] sm:$0xff] %v17_v9 }

</bundles_post_ra>
